<compile_context>
chip_gen: v6e
topology: v6e:2x2x1
jax: 0.10.0
libtpu: 0.0.40
codegen_flags: <defaults>
</compile_context>

<pallas_src>
import functools

import jax
import jax.numpy as jnp
from jax.experimental import pallas as pl
from jax.experimental.pallas import tpu as pltpu


def _gelu(x):
    # tanh-approximate GELU. PyTorch nn.GELU() defaults to the exact erf form;
    # the difference is <1e-3 and the tanh form lowers cleanly on Mosaic.
    # TODO(synk): switch to an exact erf GELU if bitwise-closer parity with the
    # PyTorch module is required.
    c = 0.7978845608028654  # sqrt(2 / pi)
    return 0.5 * x * (1.0 + jnp.tanh(c * (x + 0.044715 * x * x * x)))


# ---------------------------------------------------------------------------
# Kernel 1: fused q / kT projections (scaling folded into q).
# ---------------------------------------------------------------------------
def _proj_kernel(x_ref, wq_ref, bq_ref, wk_ref, bk_ref, q_ref, kt_ref, *,
                 scaling):
    x = x_ref[0]                                                   # [tile, S]

    q = jnp.dot(x, wq_ref[...], preferred_element_type=jnp.float32)
    q = _gelu(q + bq_ref[...]) * scaling                           # [tile, H]
    q_ref[0] = q.astype(q_ref.dtype)

    # Produce k already transposed ([H, tile]) so the adjacency kernel is a
    # plain NN matmul (no per-tile NT contraction / XLU transpose).
    kt = jax.lax.dot_general(wk_ref[...], x, (((0,), (1,)), ((), ())),
                             preferred_element_type=jnp.float32)   # [H, tile]
    kt_ref[0] = _gelu(kt + bk_ref[...]).astype(kt_ref.dtype)


# ---------------------------------------------------------------------------
# Kernel 2: adjacency matmul with 2-D output tiling.
#   adj[i, j] = q_tile(i) @ kT_tile(j)  (bf16 operands, f32 accumulation).
# ---------------------------------------------------------------------------
def _adj_kernel(q_ref, kt_ref, o_ref):
    o_ref[0] = jnp.dot(q_ref[0], kt_ref[0],
                       preferred_element_type=jnp.float32).astype(o_ref.dtype)


def _round_up(x, m):
    return ((x + m - 1) // m) * m


def _choose_tile(n_pad, cap=512):
    """Largest multiple of 128 (<= cap) that divides the 128-aligned n_pad."""
    tile = max(128, (min(cap, n_pad) // 128) * 128)
    while n_pad % tile:
        tile -= 128
    return tile


def dynamic_graph_learner_forward(inputs, wq, bq, wk, bk, *, sequence=None,
                                  out_dtype=None):
    """Pallas forward of DynamicGraphLearner (eval mode: dropout = identity).

    inputs : [B, N, S]   (batch, nodes, sequence)
    wq, wk : [S, H]      (H = int(1.5 * S); transposed vs. PyTorch [H, S])
    bq, bk : [H]
    returns adj : [B, N, N]
    """
    b, n, s = inputs.shape
    h = wq.shape[1]
    if sequence is None:
        sequence = s
    if out_dtype is None:
        # Keep the module's output precision; pass out_dtype=jnp.bfloat16 to
        # halve the HBM writeback of the N^2 adjacency if the consumer allows.
        out_dtype = inputs.dtype
    scaling = float((sequence * 1.5) ** (-0.5))

    # Pad nodes to a multiple of 128 so adjacency stores are lane-dense; the
    # padded rows/cols (GELU(bias) != 0) are sliced off below.
    n_pad = _round_up(n, 128)
    tile = _choose_tile(n_pad)
    n_tiles = n_pad // tile

    x = inputs
    if n_pad != n:
        x = jnp.pad(x, ((0, 0), (0, n_pad - n), (0, 0)))

    bq2 = bq.reshape(1, h).astype(jnp.float32)   # broadcast over q rows
    bk2 = bk.reshape(h, 1).astype(jnp.float32)   # broadcast over kT columns

    # ---- Kernel 1: q / kT projections. ----
    q, kt = pl.pallas_call(
        functools.partial(_proj_kernel, scaling=scaling),
        out_shape=(jax.ShapeDtypeStruct((b, n_pad, h), jnp.bfloat16),
                   jax.ShapeDtypeStruct((b, h, n_pad), jnp.bfloat16)),
        grid=(b, n_tiles),
        in_specs=[
            pl.BlockSpec((1, tile, s), lambda bi, i: (bi, i, 0)),   # x row tile
            pl.BlockSpec((s, h), lambda bi, i: (0, 0)),             # Wq
            pl.BlockSpec((1, h), lambda bi, i: (0, 0)),             # bq
            pl.BlockSpec((s, h), lambda bi, i: (0, 0)),             # Wk
            pl.BlockSpec((h, 1), lambda bi, i: (0, 0)),             # bk
        ],
        out_specs=(pl.BlockSpec((1, tile, h), lambda bi, i: (bi, i, 0)),
                   pl.BlockSpec((1, h, tile), lambda bi, i: (bi, 0, i))),
        compiler_params=pltpu.CompilerParams(
            dimension_semantics=("parallel", "parallel")),
    )(x, wq, bq2, wk, bk2)

    # ---- Kernel 2: adj = q @ kT, 2-D tiled, fully parallel grid. ----
    # Per-step VMEM is O(tile^2 + tile*H) (a few MiB at tile=512), well under
    # the default scoped limit on v5e/v6e/v7x, so no vmem_limit override.
    adj = pl.pallas_call(
        _adj_kernel,
        out_shape=jax.ShapeDtypeStruct((b, n_pad, n_pad), out_dtype),
        grid=(b, n_tiles, n_tiles),
        in_specs=[
            pl.BlockSpec((1, tile, h), lambda bi, i, j: (bi, i, 0)),  # q rows
            pl.BlockSpec((1, h, tile), lambda bi, i, j: (bi, 0, j)),  # kT cols
        ],
        out_specs=pl.BlockSpec((1, tile, tile), lambda bi, i, j: (bi, i, j)),
        compiler_params=pltpu.CompilerParams(
            dimension_semantics=("parallel", "parallel", "parallel")),
    )(q, kt)

    if n_pad != n:
        adj = adj[:, :n, :n]
    return adj


if __name__ == "__main__":
    key = jax.random.PRNGKey(0)
    k_x, k_wq, k_wk, k_bq, k_bk = jax.random.split(key, 5)

    batch, nodes, sequence = 2, 16, 8
    hidden = int(sequence * 1.5)                      # 12

    # Xavier-normal weights with gain=1.44 (like reset_parameters()).
    std = 1.44 * (2.0 / (sequence + hidden)) ** 0.5
    x = jax.random.normal(k_x, (batch, nodes, sequence), dtype=jnp.float32)
    wq = std * jax.random.normal(k_wq, (sequence, hidden), dtype=jnp.float32)
    wk = std * jax.random.normal(k_wk, (sequence, hidden), dtype=jnp.float32)
    bound = 1.0 / (sequence ** 0.5)                   # default nn.Linear bias range
    bq = jax.random.uniform(k_bq, (hidden,), jnp.float32, -bound, bound)
    bk = jax.random.uniform(k_bk, (hidden,), jnp.float32, -bound, bound)

    adj = dynamic_graph_learner_forward(x, wq, bq, wk, bk)
    adj = jax.block_until_ready(adj)

    # Pure-JAX f32 reference (same tanh-GELU; dropout is identity at eval).
    scaling = (sequence * 1.5) ** (-0.5)
    q_ref = _gelu(x @ wq + bq)
    k_ref = _gelu(x @ wk + bk)
    ref = (q_ref @ jnp.swapaxes(k_ref, -1, -2)) * scaling

    assert adj.shape == (batch, nodes, nodes)
    # Loose tolerance: the adjacency matmul runs with bf16 operands (f32
    # accumulation) on the MXU; structural errors would be orders larger.
    max_err = float(jnp.max(jnp.abs(adj - ref)))
    assert jnp.allclose(adj, ref, atol=5e-2, rtol=5e-2), f"max_err={max_err}"

    print("KERNEL_OK")
</pallas_src>

<mosaic_0001>
module attributes {stable_mosaic.version = 11 : i64} {
  func.func @_proj_kernel(%arg0: i32, %arg1: i32, %arg2: memref<1x128x8xf32, #tpu.memory_space<vmem>>, %arg3: memref<8x12xf32, #tpu.memory_space<vmem>>, %arg4: memref<1x12xf32, #tpu.memory_space<vmem>>, %arg5: memref<8x12xf32, #tpu.memory_space<vmem>>, %arg6: memref<12x1xf32, #tpu.memory_space<vmem>>, %arg7: memref<1x128x12xbf16, #tpu.memory_space<vmem>>, %arg8: memref<1x12x128xbf16, #tpu.memory_space<vmem>>) attributes {dimension_semantics = [#tpu.dimension_semantics<parallel>, #tpu.dimension_semantics<parallel>], iteration_bounds = array<i64: 2, 1>, scalar_prefetch = 0 : i64, scratch_operands = 0 : i64, tpu.core_type = #tpu.core_type<tc>, window_params = [{transform_indices = @transform_0, window_bounds = array<i64: 1, 128, 8>}, {pipeline_mode = #tpu.pipeline_mode<synchronous>, transform_indices = @transform_1, window_bounds = array<i64: 8, 12>}, {pipeline_mode = #tpu.pipeline_mode<synchronous>, transform_indices = @transform_2, window_bounds = array<i64: 1, 12>}, {pipeline_mode = #tpu.pipeline_mode<synchronous>, transform_indices = @transform_3, window_bounds = array<i64: 8, 12>}, {pipeline_mode = #tpu.pipeline_mode<synchronous>, transform_indices = @transform_4, window_bounds = array<i64: 12, 1>}, {transform_indices = @transform_5, window_bounds = array<i64: 1, 128, 12>}, {transform_indices = @transform_6, window_bounds = array<i64: 1, 12, 128>}]} {
    %c0 = arith.constant 0 : index
    %c0_0 = arith.constant 0 : index
    %c0_1 = arith.constant 0 : index
    %0 = vector.load %arg2[%c0, %c0_0, %c0_1] : memref<1x128x8xf32, #tpu.memory_space<vmem>>, vector<1x128x8xf32>
    %1 = vector.shape_cast %0 : vector<1x128x8xf32> to vector<128x8xf32>
    %c0_2 = arith.constant 0 : index
    %c0_3 = arith.constant 0 : index
    %2 = vector.load %arg3[%c0_2, %c0_3] : memref<8x12xf32, #tpu.memory_space<vmem>>, vector<8x12xf32>
    %cst = arith.constant dense<0.000000e+00> : vector<128x12xf32>
    %3 = tpu.matmul %1, %2, %cst {dimension_numbers = #tpu.dot_dimension_numbers<[1], [0], [0], [1], [0, 0, 1, 1], [], []>} : vector<128x8xf32>, vector<8x12xf32>, vector<128x12xf32> -> vector<128x12xf32>
    %c0_4 = arith.constant 0 : index
    %c0_5 = arith.constant 0 : index
    %4 = vector.load %arg4[%c0_4, %c0_5] : memref<1x12xf32, #tpu.memory_space<vmem>>, vector<1x12xf32>
    %5 = vector.broadcast %4 : vector<1x12xf32> to vector<128x12xf32>
    %6 = arith.addf %3, %5 : vector<128x12xf32>
    %cst_6 = arith.constant 5.000000e-01 : f32
    %7 = vector.broadcast %cst_6 : f32 to vector<128x12xf32>
    %8 = arith.mulf %7, %6 : vector<128x12xf32>
    %cst_7 = arith.constant 4.471500e-02 : f32
    %9 = vector.broadcast %cst_7 : f32 to vector<128x12xf32>
    %10 = arith.mulf %9, %6 : vector<128x12xf32>
    %11 = arith.mulf %10, %6 : vector<128x12xf32>
    %12 = arith.mulf %11, %6 : vector<128x12xf32>
    %13 = arith.addf %6, %12 : vector<128x12xf32>
    %cst_8 = arith.constant 0.797884583 : f32
    %14 = vector.broadcast %cst_8 : f32 to vector<128x12xf32>
    %15 = arith.mulf %14, %13 : vector<128x12xf32>
    %16 = math.tanh %15 : vector<128x12xf32>
    %cst_9 = arith.constant 1.000000e+00 : f32
    %17 = vector.broadcast %cst_9 : f32 to vector<128x12xf32>
    %18 = arith.addf %17, %16 : vector<128x12xf32>
    %19 = arith.mulf %8, %18 : vector<128x12xf32>
    %cst_10 = arith.constant 0.288675129 : f32
    %20 = vector.broadcast %cst_10 : f32 to vector<128x12xf32>
    %21 = arith.mulf %19, %20 : vector<128x12xf32>
    %22 = arith.truncf %21 : vector<128x12xf32> to vector<128x12xbf16>
    %c0_11 = arith.constant 0 : index
    %c0_12 = arith.constant 0 : index
    %c0_13 = arith.constant 0 : index
    %23 = vector.load %arg7[%c0_11, %c0_12, %c0_13] : memref<1x128x12xbf16, #tpu.memory_space<vmem>>, vector<1x128x12xbf16>
    %24 = vector.shape_cast %23 : vector<1x128x12xbf16> to vector<128x12xbf16>
    %25 = vector.shape_cast %22 : vector<128x12xbf16> to vector<1x128x12xbf16>
    tpu.vector_store %arg7[%c0_11, %c0_12, %c0_13], %25 {strides = array<i32>} : memref<1x128x12xbf16, #tpu.memory_space<vmem>>, vector<1x128x12xbf16>,
    %c0_14 = arith.constant 0 : index
    %c0_15 = arith.constant 0 : index
    %26 = vector.load %arg5[%c0_14, %c0_15] : memref<8x12xf32, #tpu.memory_space<vmem>>, vector<8x12xf32>
    %cst_16 = arith.constant dense<0.000000e+00> : vector<12x128xf32>
    %27 = tpu.matmul %26, %1, %cst_16 {dimension_numbers = #tpu.dot_dimension_numbers<[0], [1], [1], [0], [0, 1, 1, 0], [], []>} : vector<8x12xf32>, vector<128x8xf32>, vector<12x128xf32> -> vector<12x128xf32>
    %c0_17 = arith.constant 0 : index
    %c0_18 = arith.constant 0 : index
    %28 = vector.load %arg6[%c0_17, %c0_18] : memref<12x1xf32, #tpu.memory_space<vmem>>, vector<12x1xf32>
    %29 = vector.broadcast %28 : vector<12x1xf32> to vector<12x128xf32>
    %30 = arith.addf %27, %29 : vector<12x128xf32>
    %cst_19 = arith.constant 5.000000e-01 : f32
    %31 = vector.broadcast %cst_19 : f32 to vector<12x128xf32>
    %32 = arith.mulf %31, %30 : vector<12x128xf32>
    %cst_20 = arith.constant 4.471500e-02 : f32
    %33 = vector.broadcast %cst_20 : f32 to vector<12x128xf32>
    %34 = arith.mulf %33, %30 : vector<12x128xf32>
    %35 = arith.mulf %34, %30 : vector<12x128xf32>
    %36 = arith.mulf %35, %30 : vector<12x128xf32>
    %37 = arith.addf %30, %36 : vector<12x128xf32>
    %cst_21 = arith.constant 0.797884583 : f32
    %38 = vector.broadcast %cst_21 : f32 to vector<12x128xf32>
    %39 = arith.mulf %38, %37 : vector<12x128xf32>
    %40 = math.tanh %39 : vector<12x128xf32>
    %cst_22 = arith.constant 1.000000e+00 : f32
    %41 = vector.broadcast %cst_22 : f32 to vector<12x128xf32>
    %42 = arith.addf %41, %40 : vector<12x128xf32>
    %43 = arith.mulf %32, %42 : vector<12x128xf32>
    %44 = arith.truncf %43 : vector<12x128xf32> to vector<12x128xbf16>
    %c0_23 = arith.constant 0 : index
    %c0_24 = arith.constant 0 : index
    %c0_25 = arith.constant 0 : index
    %45 = vector.load %arg8[%c0_23, %c0_24, %c0_25] : memref<1x12x128xbf16, #tpu.memory_space<vmem>>, vector<1x12x128xbf16>
    %46 = vector.shape_cast %45 : vector<1x12x128xbf16> to vector<12x128xbf16>
    %47 = vector.shape_cast %44 : vector<12x128xbf16> to vector<1x12x128xbf16>
    tpu.vector_store %arg8[%c0_23, %c0_24, %c0_25], %47 {strides = array<i32>} : memref<1x12x128xbf16, #tpu.memory_space<vmem>>, vector<1x12x128xbf16>,
    return
  }
  func.func @transform_0(%arg0: i32, %arg1: i32) -> (i32, i32, i32) {
    %c0_i32 = arith.constant 0 : i32
    %c0_i32_0 = arith.constant 0 : i32
    return %arg0, %arg1, %c0_i32 : i32, i32, i32
  }
  func.func @transform_1(%arg0: i32, %arg1: i32) -> (i32, i32) {
    %c0_i32 = arith.constant 0 : i32
    %c0_i32_0 = arith.constant 0 : i32
    %c0_i32_1 = arith.constant 0 : i32
    return %c0_i32, %c0_i32_0 : i32, i32
  }
  func.func @transform_2(%arg0: i32, %arg1: i32) -> (i32, i32) {
    %c0_i32 = arith.constant 0 : i32
    %c0_i32_0 = arith.constant 0 : i32
    %c0_i32_1 = arith.constant 0 : i32
    return %c0_i32, %c0_i32_0 : i32, i32
  }
  func.func @transform_3(%arg0: i32, %arg1: i32) -> (i32, i32) {
    %c0_i32 = arith.constant 0 : i32
    %c0_i32_0 = arith.constant 0 : i32
    %c0_i32_1 = arith.constant 0 : i32
    return %c0_i32, %c0_i32_0 : i32, i32
  }
  func.func @transform_4(%arg0: i32, %arg1: i32) -> (i32, i32) {
    %c0_i32 = arith.constant 0 : i32
    %c0_i32_0 = arith.constant 0 : i32
    %c0_i32_1 = arith.constant 0 : i32
    return %c0_i32, %c0_i32_0 : i32, i32
  }
  func.func @transform_5(%arg0: i32, %arg1: i32) -> (i32, i32, i32) {
    %c0_i32 = arith.constant 0 : i32
    %c0_i32_0 = arith.constant 0 : i32
    return %arg0, %arg1, %c0_i32 : i32, i32, i32
  }
  func.func @transform_6(%arg0: i32, %arg1: i32) -> (i32, i32, i32) {
    %c0_i32 = arith.constant 0 : i32
    %c0_i32_0 = arith.constant 0 : i32
    return %arg0, %c0_i32, %arg1 : i32, i32, i32
  }
}

</mosaic_0001>

<bundles_post_ra>
// kernel: tpu_custom_call.1
= control target key start
LH: loop header
LB: loop body
LE: loop exit
PB: predicated region body
PF: predicated region fallthrough
CT: control target
= control target key end

     0   :  { %s1366_s21 = smov 0   ;;  %s1368_s22 = smov 0   ;;  %s1638_s0 = inlined_call_operand.vmem [shape: f32[2,128,8], index: 0, kind: input, shape index: {}]   ;;  %s1639_s1 = inlined_call_operand.vmem [shape: f32[8,12], index: 1, kind: input, shape index: {}]   ;;  %s1640_s2 = inlined_call_operand.vmem [shape: f32[1,12], index: 2, kind: input, shape index: {}]   ;;  %s1641_s3 = inlined_call_operand.vmem [shape: f32[8,12], index: 3, kind: input, shape index: {}]   ;;  %s1642_s4 = inlined_call_operand.vmem [shape: f32[12,1], index: 4, kind: input, shape index: {}]   ;;  %s1643_s5 = inlined_call_operand.vmem [shape: bf16[2,128,12], index: 5, kind: output, shape index: {0}]   ;;  %s1644_s6 = inlined_call_operand.vmem [shape: bf16[2,12,128], index: 6, kind: output, shape index: {1}]  }
   0x1   :  { %s1370_s23 = smov 0  }
   0x2 LB: > { %s29_s24 = sadd.s32 1, %s1324_s22  ;;  %p1063_p0 = scmp.ge.s32.totalorder %s1328_s23, 1  ;;  %s1328_s23 = sphi %s1370_s23, %s17_s23   ;;  %s1324_s22 = sphi %s1368_s22, %s1646_s22   ;;  %s1320_s21 = sphi %s1366_s21, %s1645_s21  }
   0x3   : > { %p31_p1 = scmp.ge.s32.totalorder %s29_s24, 2  ;;  %p238_p2 = scmp.lt.s32.totalorder %s1328_s23, 3 }
   0x5   : > { %s1648_s24 = smov (%p31_p1, %s29_s24), 0  ;;  %p239_p3 = pnand %p1063_p0, %p238_p2 }
   0x6   : > { %p285_p4 = scmp.lt.s32.totalorder (!%p239_p3), %s1320_s21, 1 }
   0x7   : > { %242 = sbr.rel (%p239_p3) target bundleno = 370 (0x172), region = 40 }
   0xc   : > { %v771_v0 = vld [vmem:[%s1641_s3] sm:$0xff]  ;;  %s1650_s21 = smov (!%p285_p4, %s1320_s21), 1  ;;  %v773_v2 = vld [vmem:[%s1642_s4 + $0x8] sm:$0xf]  ;;  %v1330_v3 = vmov 0   ;;  %vm336_vm0 = vcmask 64512  }
   0xd   : > { %v328_v1 = vld [vmem:[%s1639_s1] sm:$0xff]  ;;  %784 = vxpose.xlu0.b32.start.end [1/1] (short) (narrow) %v771_v0, 16  ;;  %1269 = vset.pattern.permute.xlu1 %v1330_v3  ;;  %s1125_s7 = sshll.u32 %s1650_s21, 7  ;;  %vm754_vm1 = vcmask 93184   ;;  %s1126_s15 = sshll.u32 %s1650_s21, 6 }
   0xe   : > { %1181 = vmatprep.subr.mxu0 %v328_v1  ;;  %781 = vperm.xlu1 %1269, %v773_v2   ;;  %s1399_s10 = scalar_lea.vmem %s1638_s0, %s1125_s7  ;;  %v772_v20 = vld [vmem:[%s1642_s4] sm:$0xff]  ;;  %s1559_s18 = scalar_lea.vmem %s1643_s5, %s1126_s15 }
   0xf   : > { %1182 = vmatpush3.msra.mxu0 %v328_v1  ;;  %v327_v4 = vld [vmem:[%s1399_s10 + $0x78] sm:$0xff]  ;;  %v326_v5 = vld [vmem:[%s1399_s10 + $0x70] sm:$0xff]  ;;  %v1404_v6 = vld [vmem:[%s1399_s10] sm:$0xff]  ;;  %s1127_s19 = sshll.u32 %s1650_s21, 3 }
  0x10   : > { %1207 = vmatprep.subr.msk.mxu1 %vm336_vm0, %v327_v4  ;;  %1183 = vmatprep.mubr.msk.f32.mxu0 %vm336_vm0, %v1404_v6  ;;  %v313_v7 = vld [vmem:[%s1399_s10 + $0x8] sm:$0xff]  ;;  %v314_v8 = vld [vmem:[%s1399_s10 + $0x10] sm:$0xff]  ;;  %v315_v9 = vld [vmem:[%s1399_s10 + $0x18] sm:$0xff]  ;;  %s311_s26 = scalar_lea.vmem %s1644_s6, %s1127_s19 }
  0x11   : > { %1208 = vmatpush3.xpose.msk.msra.mxu1 %vm336_vm0, %v327_v4  ;;  %1184 = vmatmul.mubr.msk.f32.vlgmr.msra.gmra.mxu0 %vm336_vm0, %v313_v7  ;;  %v325_v10 = vld [vmem:[%s1399_s10 + $0x68] sm:$0xff]  ;;  %v316_v11 = vld [vmem:[%s1399_s10 + $0x20] sm:$0xff]  ;;  %v318_v14 = vld [vmem:[%s1399_s10 + $0x30] sm:$0xff] }
  0x12   : > { %1209 = vmatprep.subr.msk.mxu1 %vm336_vm0, %v326_v5  ;;  %1186 = vmatprep.mubr.msk.f32.mxu0 %vm336_vm0, %v314_v8  ;;  %v317_v12 = vld [vmem:[%s1399_s10 + $0x28] sm:$0xff]  ;;  %v324_v13 = vld [vmem:[%s1399_s10 + $0x60] sm:$0xff]  ;;  %v319_v15 = vld [vmem:[%s1399_s10 + $0x38] sm:$0xff] }
  0x13   : > { %v323_v16 = vld [vmem:[%s1399_s10 + $0x58] sm:$0xff]  ;;  %v320_v17 = vld [vmem:[%s1399_s10 + $0x40] sm:$0xff]  ;;  %v321_v18 = vld [vmem:[%s1399_s10 + $0x48] sm:$0xff] }
  0x14   : > { %v322_v19 = vld [vmem:[%s1399_s10 + $0x50] sm:$0xff]  ;;  %v1478_v23 = vld [vmem:[%s1640_s2] ss:$0 sm:$0xff] }
  0x15   : > { %1210 = vmatpush3.xpose.msk.msra.mxu1 %vm336_vm0, %v326_v5  ;;  %1187 = vmatmul.mubr.msk.f32.gmra.mxu0 %vm336_vm0, %v315_v9 }
  0x16   : > { %1211 = vmatprep.subr.msk.mxu1 %vm336_vm0, %v325_v10  ;;  %1189 = vmatprep.mubr.msk.f32.mxu0 %vm336_vm0, %v316_v11 }
  0x19   : > { %1212 = vmatpush3.xpose.msk.msra.mxu1 %vm336_vm0, %v325_v10  ;;  %1190 = vmatmul.mubr.msk.f32.gmra.mxu0 %vm336_vm0, %v317_v12 }
  0x1a   : > { %1213 = vmatprep.subr.msk.mxu1 %vm336_vm0, %v324_v13  ;;  %1192 = vmatprep.mubr.msk.f32.mxu0 %vm336_vm0, %v318_v14 }
  0x1d   : > { %1214 = vmatpush3.xpose.msk.msra.mxu1 %vm336_vm0, %v324_v13  ;;  %1193 = vmatmul.mubr.msk.f32.gmra.mxu0 %vm336_vm0, %v319_v15 }
  0x1e   : > { %1215 = vmatprep.subr.msk.mxu1 %vm336_vm0, %v323_v16  ;;  %1195 = vmatprep.mubr.msk.f32.mxu0 %vm336_vm0, %v320_v17 }
  0x21   : > { %1216 = vmatpush3.xpose.msk.msra.mxu1 %vm336_vm0, %v323_v16  ;;  %1196 = vmatmul.mubr.msk.f32.gmra.mxu0 %vm336_vm0, %v321_v18 }
  0x22   : > { %1217 = vmatprep.subr.msk.mxu1 %vm336_vm0, %v322_v19  ;;  %1198 = vmatprep.mubr.msk.f32.mxu0 %vm336_vm0, %v322_v19 }
  0x25   : > { %1218 = vmatpush3.xpose.msk.msra.mxu1 %vm336_vm0, %v322_v19  ;;  %1199 = vmatmul.mubr.msk.f32.gmra.mxu0 %vm336_vm0, %v323_v16 }
  0x26   : > { %1219 = vmatprep.subr.msk.mxu1 %vm336_vm0, %v321_v18  ;;  %1201 = vmatprep.mubr.msk.f32.mxu0 %vm336_vm0, %v324_v13 }
  0x29   : > { %1220 = vmatpush3.xpose.msk.msra.mxu1 %vm336_vm0, %v321_v18  ;;  %1202 = vmatmul.mubr.msk.f32.gmra.mxu0 %vm336_vm0, %v325_v10 }
  0x2a   : > { %1221 = vmatprep.subr.msk.mxu1 %vm336_vm0, %v320_v17  ;;  %1204 = vmatprep.mubr.msk.f32.mxu0 %vm336_vm0, %v326_v5 }
  0x2d   : > { %1222 = vmatpush3.xpose.msk.msra.mxu1 %vm336_vm0, %v320_v17  ;;  %1205 = vmatmul.mubr.msk.f32.gmra.mxu0 %vm336_vm0, %v327_v4 }
  0x2e   : > { %1223 = vmatprep.subr.msk.mxu1 %vm336_vm0, %v319_v15 }
  0x31   : > { %1224 = vmatpush3.xpose.msk.msra.mxu1 %vm336_vm0, %v319_v15 }
  0x32   : > { %1225 = vmatprep.subr.msk.mxu1 %vm336_vm0, %v318_v14 }
  0x35   : > { %1226 = vmatpush3.xpose.msk.msra.mxu1 %vm336_vm0, %v318_v14 }
  0x36   : > { %1268 = vset.pattern.permute.xlu0 %v1330_v3  ;;  %1227 = vmatprep.subr.msk.mxu1 %vm336_vm0, %v317_v12 }
  0x39   : > { %1228 = vmatpush3.xpose.msk.msra.mxu1 %vm336_vm0, %v317_v12 }
  0x3a   : > { %776 = vperm.xlu0 %1268, %v772_v20   ;;  %1229 = vmatprep.subr.msk.mxu1 %vm336_vm0, %v316_v11 }
  0x3d   : > { %1230 = vmatpush3.xpose.msk.msra.mxu1 %vm336_vm0, %v316_v11 }
  0x3e   : > { %1231 = vmatprep.subr.msk.mxu1 %vm336_vm0, %v315_v9 }
  0x41   : > { %1232 = vmatpush3.xpose.msk.msra.mxu1 %vm336_vm0, %v315_v9 }
  0x42   : > { %1233 = vmatprep.subr.msk.mxu1 %vm336_vm0, %v314_v8 }
  0x45   : > { %1234 = vmatpush3.xpose.msk.msra.mxu1 %vm336_vm0, %v314_v8 }
  0x46   : > { %1235 = vmatprep.subr.msk.mxu1 %vm336_vm0, %v313_v7 }
  0x49   : > { %1236 = vmatpush3.xpose.msk.msra.mxu1 %vm336_vm0, %v313_v7 }
  0x4a   : > { %1237 = vmatprep.subr.msk.mxu1 %vm336_vm0, %v1404_v6 }
  0x4d   : > { %1238 = vmatpush3.xpose.msk.msra.mxu1 %vm336_vm0, %v1404_v6 }
  0x89   : > { %v800_v21 = vpop.trf.xlu0 }
  0x8a   : > { %1239 = vmatprep.mubr.msk.f32.mxu1 %vm336_vm0, %v800_v21 }
  0x8d   : > { %v801_v22 = vpop.trf.xlu0 }
  0x8e   : > { %1240 = vmatmul.mubr.msk.f32.vlgmr.msra.gmra.mxu1 %vm336_vm0, %v801_v22 }
  0xd1   : > { %v1185_v24 = vpop.f32.mrf.mxu0 }
  0xd2   : > { %v457_v25 = vadd.f32 %v1185_v24, %v1478_v23 }
  0xd3   : > { %v451_v26 = vpop.f32.mrf.mxu0 }
  0xd4   : > { %v547_v27 = vmul.f32 0.044715, %v457_v25  ;;  %v452_v28 = vadd.f32 %v1478_v23, %v451_v26  ;;  %v531_v8 = vmul.f32 0.5, %v457_v25 }
  0xd5   : > { %v1188_v29 = vpop.f32.mrf.mxu0 }
  0xd6   : > { %v563_v30 = vmul.f32 %v547_v27, %v457_v25  ;;  %v546_v31 = vmul.f32 0.044715, %v452_v28  ;;  %v467_v32 = vadd.f32 %v1188_v29, %v1478_v23  ;;  %v530_v20 = vmul.f32 0.5, %v452_v28 }
  0xd7   : > { %v461_v33 = vpop.f32.mrf.mxu0 }
  0xd8   : > { %v579_v34 = vmul.f32 %v563_v30, %v457_v25  ;;  %v562_v35 = vmul.f32 %v546_v31, %v452_v28  ;;  %v549_v36 = vmul.f32 0.044715, %v467_v32  ;;  %v1484_v37 = vadd.f32 %v1478_v23, %v461_v33 }
  0xd9   : > { %v1191_v38 = vpop.f32.mrf.mxu0 }
  0xda   : > { %v595_v39 = vadd.f32 %v579_v34, %v457_v25  ;;  %v578_v40 = vmul.f32 %v562_v35, %v452_v28  ;;  %v565_v41 = vmul.f32 %v549_v36, %v467_v32  ;;  %v1487_v42 = vadd.f32 %v1191_v38, %v1478_v23 }
  0xdb   : > { %v548_v43 = vmul.f32 0.044715, %v1484_v37  ;;  %v471_v44 = vpop.f32.mrf.mxu0  ;;  %v533_v25 = vmul.f32 0.5, %v467_v32  ;;  %v532_v38 = vmul.f32 0.5, %v1484_v37 }
  0xdc   : > { %v611_v45 = vmul.f32 0.7978846, %v595_v39  ;;  %v594_v46 = vadd.f32 %v578_v40, %v452_v28  ;;  %v581_v47 = vmul.f32 %v565_v41, %v467_v32  ;;  %v551_v49 = vmul.f32 0.044715, %v1487_v42 }
  0xdd   : > { %v564_v48 = vmul.f32 %v548_v43, %v1484_v37  ;;  %v1493_v50 = vadd.f32 %v1478_v23, %v471_v44  ;;  %v1194_v51 = vpop.f32.mrf.mxu0 }
  0xde   : > { %1270 = vtanh.f32 %v611_v45  ;;  %v610_v52 = vmul.f32 0.7978846, %v594_v46  ;;  %v597_v53 = vadd.f32 %v581_v47, %v467_v32  ;;  %v1496_v54 = vadd.f32 %v1194_v51, %v1478_v23 }
  0xdf   : > { %v580_v55 = vmul.f32 %v564_v48, %v1484_v37  ;;  %v567_v56 = vmul.f32 %v551_v49, %v1487_v42  ;;  %v550_v57 = vmul.f32 0.044715, %v1493_v50  ;;  %v481_v58 = vpop.f32.mrf.mxu0  ;;  %v535_v45 = vmul.f32 0.5, %v1487_v42 }
  0xe0   : > { %1272 = vtanh.f32 %v610_v52  ;;  %v613_v59 = vmul.f32 0.7978846, %v597_v53  ;;  %v553_v60 = vmul.f32 0.044715, %v1496_v54  ;;  %v1506_v0 = vadd.f32 %v1478_v23, %v481_v58 }
  0xe1   : > { %v596_v61 = vadd.f32 %v580_v55, %v1484_v37  ;;  %v583_v62 = vmul.f32 %v567_v56, %v1487_v42  ;;  %v566_v63 = vmul.f32 %v550_v57, %v1493_v50  ;;  %v1197_v1 = vpop.f32.mrf.mxu0 }
  0xe2   : > { %1274 = vtanh.f32 %v613_v59  ;;  %v569_v2 = vmul.f32 %v553_v60, %v1496_v54  ;;  %v1510_v3 = vadd.f32 %v1197_v1, %v1478_v23  ;;  %v552_v10 = vmul.f32 0.044715, %v1506_v0 }
  0xe3   : > { %v612_v4 = vmul.f32 0.7978846, %v596_v61  ;;  %v599_v5 = vadd.f32 %v583_v62, %v1487_v42  ;;  %v582_v6 = vmul.f32 %v566_v63, %v1493_v50  ;;  %v491_v7 = vpop.f32.mrf.mxu0  ;;  %v534_v1 = vmul.f32 0.5, %v1493_v50 }
  0xe4   : > { %v585_v9 = vmul.f32 %v569_v2, %v1496_v54  ;;  %v555_v11 = vmul.f32 0.044715, %v1510_v3  ;;  %v1519_v14 = vadd.f32 %v1478_v23, %v491_v7  ;;  %v568_v17 = vmul.f32 %v552_v10, %v1506_v0 }
  0xe5   : > { %1276 = vtanh.f32 %v612_v4  ;;  %v615_v12 = vmul.f32 0.7978846, %v599_v5  ;;  %v598_v13 = vadd.f32 %v582_v6, %v1493_v50  ;;  %v1200_v15 = vpop.f32.mrf.mxu0 }
  0xe6   : > { %v601_v16 = vadd.f32 %v585_v9, %v1496_v54  ;;  %v571_v18 = vmul.f32 %v555_v11, %v1510_v3  ;;  %v1525_v19 = vadd.f32 %v1200_v15, %v1478_v23  ;;  %v554_v22 = vmul.f32 0.044715, %v1519_v14 }
  0xe7   : > { %1278 = vtanh.f32 %v615_v12  ;;  %v614_v21 = vmul.f32 0.7978846, %v598_v13  ;;  %v501_v24 = vpop.f32.mrf.mxu0  ;;  %v584_v27 = vmul.f32 %v568_v17, %v1506_v0 }
  0xe8   : > { %v617_v26 = vmul.f32 0.7978846, %v601_v16  ;;  %v587_v29 = vmul.f32 %v571_v18, %v1510_v3  ;;  %v570_v30 = vmul.f32 %v554_v22, %v1519_v14  ;;  %v557_v31 = vmul.f32 0.044715, %v1525_v19 }
  0xe9   : > { %1280 = vtanh.f32 %v614_v21  ;;  %v1533_v33 = vadd.f32 %v1478_v23, %v501_v24  ;;  %v1203_v28 = vpop.f32.mrf.mxu0  ;;  %v600_v34 = vadd.f32 %v584_v27, %v1506_v0  ;;  %v537_v27 = vmul.f32 0.5, %v1496_v54 }
  0xea   : > { %1282 = vtanh.f32 %v617_v26  ;;  %v603_v32 = vadd.f32 %v587_v29, %v1510_v3  ;;  %v1538_v35 = vadd.f32 %v1203_v28, %v1478_v23  ;;  %v586_v39 = vmul.f32 %v570_v30, %v1519_v14 }
  0xeb   : > { %v1271_v36 = vpop.eup %1270  ;;  %v573_v40 = vmul.f32 %v557_v31, %v1525_v19  ;;  %v556_v41 = vmul.f32 0.044715, %v1533_v33  ;;  %v511_v43 = vpop.f32.mrf.mxu0  ;;  %v616_v46 = vmul.f32 0.7978846, %v600_v34 }
  0xec   : > { %v643_v44 = vadd.f32 1.0, %v1271_v36  ;;  %v619_v47 = vmul.f32 0.7978846, %v603_v32  ;;  %v602_v49 = vadd.f32 %v586_v39, %v1519_v14  ;;  %v559_v37 = vmul.f32 0.044715, %v1538_v35 }
  0xed   : > { %v1273_v48 = vpop.eup %1272  ;;  %v589_v51 = vmul.f32 %v573_v40, %v1525_v19  ;;  %v572_v52 = vmul.f32 %v556_v41, %v1533_v33  ;;  %1284 = vtanh.f32 %v616_v46  ;;  %v1551_v56 = vadd.f32 %v1478_v23, %v511_v43  ;;  %v1206_v5 = vpop.f32.mrf.mxu0 }
  0xee   : > { %v659_v53 = vmul.f32 %v643_v44, %v531_v8  ;;  %v642_v55 = vadd.f32 1.0, %v1273_v48  ;;  %1286 = vtanh.f32 %v619_v47  ;;  %v618_v42 = vmul.f32 0.7978846, %v602_v49 }
  0xef   : > { %v1275_v57 = vpop.eup %1274  ;;  %v605_v58 = vadd.f32 %v589_v51, %v1525_v19  ;;  %v588_v59 = vmul.f32 %v572_v52, %v1533_v33  ;;  %v575_v63 = vmul.f32 %v559_v37, %v1538_v35  ;;  %v558_v13 = vmul.f32 0.044715, %v1551_v56  ;;  %v521_v24 = vpop.f32.mrf.mxu0 }
  0xf0   : > { %v675_v60 = vmul.f32 0.28867513, %v659_v53  ;;  %v658_v61 = vmul.f32 %v642_v55, %v530_v20  ;;  %v645_v62 = vadd.f32 1.0, %v1275_v57  ;;  %1288 = vtanh.f32 %v618_v42 }
  0xf1   : > { %v621_v2 = vmul.f32 0.7978846, %v605_v58  ;;  %v604_v4 = vadd.f32 %v588_v59, %v1533_v33  ;;  %v591_v10 = vmul.f32 %v575_v63, %v1538_v35  ;;  %v1569_v18 = vadd.f32 %v1206_v5, %v1478_v23 }
  0xf2   : > { %v1277_v6 = vpop.eup %1276  ;;  %v1129_v7 = vpack.c.bf16 %v675_v60, %v675_v60  ;;  %v674_v8 = vmul.f32 0.28867513, %v658_v61  ;;  %v661_v9 = vmul.f32 %v645_v62, %v533_v25  ;;  %v574_v22 = vmul.f32 %v558_v13, %v1551_v56 }
  0xf3   : > { %v644_v11 = vadd.f32 1.0, %v1277_v6  ;;  %1290 = vtanh.f32 %v621_v2  ;;  %v620_v12 = vmul.f32 0.7978846, %v604_v4  ;;  %v607_v17 = vadd.f32 %v591_v10, %v1538_v35 }
  0xf4   : > { %v1279_v15 = vpop.eup %1278  ;;  %756 = vst.msk [vmem:[%s1559_s18 + $0x4] sm:$0xf] %vm754_vm1, %v1129_v7  ;;  %v1128_v50 = vpack.c.bf16 %v674_v8, %v674_v8  ;;  %v677_v16 = vmul.f32 0.28867513, %v661_v9  ;;  %v561_v30 = vmul.f32 0.044715, %v1569_v18  ;;  %v590_v36 = vmul.f32 %v574_v22, %v1551_v56 }
  0xf5   : > { %v660_v20 = vmul.f32 %v644_v11, %v532_v38  ;;  %v647_v21 = vadd.f32 1.0, %v1279_v15  ;;  %1292 = vtanh.f32 %v620_v12  ;;  %v623_v29 = vmul.f32 0.7978846, %v607_v17 }
  0xf6   : > { %v1281_v25 = vpop.eup %1280  ;;  %755 = vst.msk [vmem:[%s1559_s18] sm:$0xf] %vm754_vm1, %v1128_v50  ;;  %v1131_v26 = vpack.c.bf16 %v677_v16, %v677_v16  ;;  %v577_v39 = vmul.f32 %v561_v30, %v1569_v18  ;;  %v1581_v40 = vadd.f32 %v1478_v23, %v521_v24  ;;  %v606_v44 = vadd.f32 %v590_v36, %v1551_v56 }
  0xf7   : > { %v1283_v31 = vpop.eup %1282  ;;  %v676_v28 = vmul.f32 0.28867513, %v660_v20  ;;  %v663_v34 = vmul.f32 %v647_v21, %v535_v45  ;;  %v646_v32 = vadd.f32 1.0, %v1281_v25  ;;  %1294 = vtanh.f32 %v623_v29 }
  0xf8   : > { %758 = vst.msk [vmem:[%s1559_s18 + $0xc] sm:$0xf] %vm754_vm1, %v1131_v26  ;;  %v649_v38 = vadd.f32 1.0, %v1283_v31  ;;  %v536_v46 = vmul.f32 0.5, %v1506_v0  ;;  %v593_v47 = vmul.f32 %v577_v39, %v1569_v18  ;;  %v560_v48 = vmul.f32 0.044715, %v1581_v40 }
  0xf9   : > { %v1130_v54 = vpack.c.bf16 %v676_v28, %v676_v28  ;;  %v679_v41 = vmul.f32 0.28867513, %v663_v34  ;;  %v662_v43 = vmul.f32 %v646_v32, %v534_v1  ;;  %v539_v23 = vmul.f32 0.5, %v1510_v3 }
  0xfa   : > { %v665_v45 = vmul.f32 %v649_v38, %v537_v27  ;;  %v1285_v49 = vpop.eup %1284  ;;  %v622_v37 = vmul.f32 0.7978846, %v606_v44  ;;  %v609_v42 = vadd.f32 %v593_v47, %v1569_v18  ;;  %v576_v0 = vmul.f32 %v560_v48, %v1581_v40 }
  0xfb   : > { %757 = vst.msk [vmem:[%s1559_s18 + $0x8] sm:$0xf] %vm754_vm1, %v1130_v54  ;;  %v1133_v51 = vpack.c.bf16 %v679_v41, %v679_v41  ;;  %v678_v52 = vmul.f32 0.28867513, %v662_v43  ;;  %v1287_v53 = vpop.eup %1286  ;;  %v648_v57 = vadd.f32 1.0, %v1285_v49  ;;  %v538_v60 = vmul.f32 0.5, %v1519_v14 }
  0xfc   : > { %v681_v55 = vmul.f32 0.28867513, %v665_v45  ;;  %v651_v59 = vadd.f32 1.0, %v1287_v53  ;;  %1296 = vtanh.f32 %v622_v37  ;;  %v625_v63 = vmul.f32 0.7978846, %v609_v42  ;;  %v777_v37 = vpop.permute.xlu0 %776 }
  0xfd   : > { %760 = vst.msk [vmem:[%s1559_s18 + $0x14] sm:$0xf] %vm754_vm1, %v1133_v51  ;;  %v1132_v58 = vpack.c.bf16 %v678_v52, %v678_v52  ;;  %v1289_v61 = vpop.eup %1288  ;;  %v664_v3 = vmul.f32 %v648_v57, %v536_v46  ;;  %v592_v1 = vmul.f32 %v576_v0, %v1581_v40  ;;  %v541_v5 = vmul.f32 0.5, %v1525_v19  ;;  %v782_v52 = vpop.permute.xlu1 %781 }
  0xfe   : > { %v1135_v62 = vpack.c.bf16 %v681_v55, %v681_v55  ;;  %v667_v2 = vmul.f32 %v651_v59, %v539_v23  ;;  %v650_v4 = vadd.f32 1.0, %v1289_v61  ;;  %1298 = vtanh.f32 %v625_v63 }
  0xff   : > { %759 = vst.msk [vmem:[%s1559_s18 + $0x10] sm:$0xf] %vm754_vm1, %v1132_v58  ;;  %v680_v7 = vmul.f32 0.28867513, %v664_v3  ;;  %v608_v14 = vadd.f32 %v592_v1, %v1581_v40  ;;  %v540_v11 = vmul.f32 0.5, %v1533_v33  ;;  %v543_v20 = vmul.f32 0.5, %v1538_v35 }
 0x100   : > { %v1291_v6 = vpop.eup %1290  ;;  %762 = vst.msk [vmem:[%s1559_s18 + $0x1c] sm:$0xf] %vm754_vm1, %v1135_v62  ;;  %v683_v8 = vmul.f32 0.28867513, %v667_v2  ;;  %v666_v9 = vmul.f32 %v650_v4, %v538_v60  ;;  %v542_v35 = vmul.f32 0.5, %v1551_v56  ;;  %v545_v36 = vmul.f32 0.5, %v1569_v18 }
 0x101   : > { %v653_v10 = vadd.f32 1.0, %v1291_v6  ;;  %v1134_v13 = vpack.c.bf16 %v680_v7, %v680_v7  ;;  %v624_v15 = vmul.f32 0.7978846, %v608_v14  ;;  %v544_v56 = vmul.f32 0.5, %v1581_v40 }
 0x102   : > { %v1293_v12 = vpop.eup %1292  ;;  %v1137_v50 = vpack.c.bf16 %v683_v8, %v683_v8  ;;  %v682_v19 = vmul.f32 0.28867513, %v666_v9 }
 0x103   : > { %v669_v16 = vmul.f32 %v653_v10, %v541_v5  ;;  %v652_v17 = vadd.f32 1.0, %v1293_v12  ;;  %761 = vst.msk [vmem:[%s1559_s18 + $0x18] sm:$0xf] %vm754_vm1, %v1134_v13  ;;  %1300 = vtanh.f32 %v624_v15 }
 0x104   : > { %v1295_v21 = vpop.eup %1294  ;;  %764 = vst.msk [vmem:[%s1559_s18 + $0x24] sm:$0xf] %vm754_vm1, %v1137_v50  ;;  %v1136_v22 = vpack.c.bf16 %v682_v19, %v682_v19 }
 0x105   : > { %v685_v33 = vmul.f32 0.28867513, %v669_v16  ;;  %v668_v24 = vmul.f32 %v652_v17, %v540_v11  ;;  %v655_v25 = vadd.f32 1.0, %v1295_v21 }
 0x106   : > { %763 = vst.msk [vmem:[%s1559_s18 + $0x20] sm:$0xf] %vm754_vm1, %v1136_v22 }
 0x107   : > { %v1139_v26 = vpack.c.bf16 %v685_v33, %v685_v33  ;;  %v684_v27 = vmul.f32 0.28867513, %v668_v24  ;;  %v671_v29 = vmul.f32 %v655_v25, %v543_v20 }
 0x109   : > { %766 = vst.msk [vmem:[%s1559_s18 + $0x2c] sm:$0xf] %vm754_vm1, %v1139_v26  ;;  %v1138_v30 = vpack.c.bf16 %v684_v27, %v684_v27  ;;  %v1297_v31 = vpop.eup %1296  ;;  %v687_v28 = vmul.f32 0.28867513, %v671_v29 }
 0x10a   : > { %v654_v34 = vadd.f32 1.0, %v1297_v31 }
 0x10b   : > { %765 = vst.msk [vmem:[%s1559_s18 + $0x28] sm:$0xf] %vm754_vm1, %v1138_v30  ;;  %v1141_v32 = vpack.c.bf16 %v687_v28, %v687_v28  ;;  %v1299_v38 = vpop.eup %1298 }
 0x10c   : > { %v670_v39 = vmul.f32 %v654_v34, %v542_v35  ;;  %v657_v54 = vadd.f32 1.0, %v1299_v38 }
 0x10d   : > { %768 = vst.msk [vmem:[%s1559_s18 + $0x34] sm:$0xf] %vm754_vm1, %v1141_v32 }
 0x10e   : > { %v686_v41 = vmul.f32 0.28867513, %v670_v39  ;;  %v673_v43 = vmul.f32 %v657_v54, %v545_v36 }
 0x110   : > { %v1301_v44 = vpop.eup %1300  ;;  %v1140_v45 = vpack.c.bf16 %v686_v41, %v686_v41  ;;  %v689_v46 = vmul.f32 0.28867513, %v673_v43 }
 0x111   : > { %v656_v47 = vadd.f32 1.0, %v1301_v44 }
 0x112   : > { %767 = vst.msk [vmem:[%s1559_s18 + $0x30] sm:$0xf] %vm754_vm1, %v1140_v45  ;;  %v1143_v48 = vpack.c.bf16 %v689_v46, %v689_v46 }
 0x113   : > { %v672_v49 = vmul.f32 %v656_v47, %v544_v56 }
 0x114   : > { %770 = vst.msk [vmem:[%s1559_s18 + $0x3c] sm:$0xf] %vm754_vm1, %v1143_v48 }
 0x115   : > { %v688_v18 = vmul.f32 0.28867513, %v672_v49 }
 0x117   : > { %v1142_v51 = vpack.c.bf16 %v688_v18, %v688_v18 }
 0x119   : > { %769 = vst.msk [vmem:[%s1559_s18 + $0x38] sm:$0xf] %vm754_vm1, %v1142_v51 }
 0x14e   : > { %v1241_v23 = vpop.f32.mrf.mxu1 }
 0x14f   : > { %v894_v53 = vadd.f32 %v1241_v23, %v782_v52 }
 0x150   : > { %v888_v40 = vpop.f32.mrf.mxu1 }
 0x151   : > { %v900_v55 = vmul.f32 0.044715, %v894_v53  ;;  %v889_v57 = vadd.f32 %v888_v40, %v777_v37  ;;  %v898_v2 = vmul.f32 0.5, %v894_v53 }
 0x153   : > { %v902_v42 = vmul.f32 %v900_v55, %v894_v53  ;;  %v899_v0 = vmul.f32 0.044715, %v889_v57  ;;  %v897_v7 = vmul.f32 0.5, %v889_v57 }
 0x155   : > { %v904_v58 = vmul.f32 %v902_v42, %v894_v53  ;;  %v901_v59 = vmul.f32 %v899_v0, %v889_v57 }
 0x157   : > { %v906_v60 = vadd.f32 %v904_v58, %v894_v53  ;;  %v903_v61 = vmul.f32 %v901_v59, %v889_v57 }
 0x159   : > { %v908_v62 = vmul.f32 0.7978846, %v906_v60  ;;  %v905_v3 = vadd.f32 %v903_v61, %v889_v57 }
 0x15b   : > { %1302 = vtanh.f32 %v908_v62  ;;  %v907_v63 = vmul.f32 0.7978846, %v905_v3 }
 0x15d   : > { %1304 = vtanh.f32 %v907_v63 }
 0x168   : > { %v1303_v1 = vpop.eup %1302 }
 0x169   : > { %v912_v4 = vadd.f32 1.0, %v1303_v1 }
 0x16a   : > { %v1305_v5 = vpop.eup %1304 }
 0x16b   : > { %v914_v6 = vmul.f32 %v912_v4, %v898_v2  ;;  %v911_v14 = vadd.f32 1.0, %v1305_v5 }
 0x16d   : > { %v1145_v8 = vpack.c.bf16 %v914_v6, %v914_v6  ;;  %v913_v9 = vmul.f32 %v911_v14, %v897_v7 }
 0x16f   : > { %924 = vst [vmem:[%s311_s26 + $0x4] sm:$0x3] %v1145_v8  ;;  %v1144_v10 = vpack.c.bf16 %v913_v9, %v913_v9 }
 0x171   : > { %923 = vst [vmem:[%s311_s26] sm:$0xf] %v1144_v10 }
 0x172 PF: > { %s17_s23 = sadd.s32 1, %s1328_s23   ;;  %s1645_s21 = smov %s1324_s22 }
 0x173   : > { %p14_p5 = scmp.ge.s32.totalorder %s17_s23, 4   ;;  %s1646_s22 = smov %s1648_s24 }
 0x175   :  { %16 = sbr.rel (!%p14_p5) target bundleno = 2 (0x2), region = 82 }

</bundles_post_ra>
